<compile_context>
chip_gen: v7x
topology: tpu7x:2x2x1
jax: 0.10.0
libtpu: 0.0.40
codegen_flags: <defaults>
</compile_context>

<pallas_src>
import functools
import math

import jax
import jax.numpy as jnp
from jax.experimental import pallas as pl
from jax.experimental.pallas import tpu as pltpu

_NEG_INF = -1e30                      # finite "-inf": keeps exp/max NaN-free
_VMEM_LIMIT_BYTES = 40 * 1024 * 1024  # > v5e 16MiB scoped default, < v7x 64MiB


def _round_up(x, m):
    return ((x + m - 1) // m) * m


def _pick_tile(dim, desired, align):
    """Tile size: multiple of `align`, <= ~`desired`, minimizing (#tiles, pad).

    Replaces the old full-extent divisibility fallback: non-divisible dims are
    zero-padded up to a tile multiple instead of collapsing to one huge block.
    """
    desired = max(align, (desired // align) * align)
    padded_min = _round_up(dim, align)
    if padded_min <= desired:
        return padded_min
    best_key, best_t = None, align
    t = align
    while t <= desired:
        padded = _round_up(dim, t)
        key = (padded // t, padded, -t)   # fewest tiles, least pad, largest tile
        if best_key is None or key < best_key:
            best_key, best_t = key, t
        t += align
    return best_t


# ---------------------------------------------------------------------------
# Fused flash-attention kernel body: softmax(scale * q @ k^T) @ v
# (shared by both layouts; the kv axis is always the last grid axis)
# ---------------------------------------------------------------------------
def _flash_attn_kernel(q_ref, k_ref, v_ref, o_ref, m_sc, l_sc, acc_sc, *,
                       scale, kv_axis, block_k, seq_len, needs_mask):
    kv_idx = pl.program_id(kv_axis)

    @pl.when(kv_idx == 0)
    def _init():
        m_sc[...] = jnp.full_like(m_sc, _NEG_INF)
        l_sc[...] = jnp.zeros_like(l_sc)
        acc_sc[...] = jnp.zeros_like(acc_sc)

    # Native-dtype (bf16/f32) MXU matmul with f32 accumulation; scale applied
    # to the f32 scores instead of upcasting/pre-scaling q.
    s = jax.lax.dot_general(
        q_ref[...], k_ref[...], (((1,), (1,)), ((), ())),
        preferred_element_type=jnp.float32) * scale           # (bq, bk) f32

    if needs_mask:  # mask zero-padded key positions (seq padded to block mult)
        col = kv_idx * block_k + jax.lax.broadcasted_iota(jnp.int32, s.shape, 1)
        s = jnp.where(col < seq_len, s, _NEG_INF)

    m_prev = m_sc[...]
    m_new = jnp.maximum(m_prev, jnp.max(s, axis=-1, keepdims=True))
    alpha = jnp.exp(m_prev - m_new)
    p = jnp.exp(s - m_new)

    l_sc[...] = alpha * l_sc[...] + jnp.sum(p, axis=-1, keepdims=True)
    acc_sc[...] = alpha * acc_sc[...] + jnp.dot(
        p.astype(v_ref.dtype), v_ref[...], preferred_element_type=jnp.float32)
    m_sc[...] = m_new

    @pl.when(kv_idx == pl.num_programs(kv_axis) - 1)
    def _finalize():
        inv_l = pl.reciprocal(l_sc[...], approx=True)          # EUP slot
        o_ref[...] = (acc_sc[...] * inv_l).astype(o_ref.dtype)


def _flash_scratch(bq, hd):
    return [
        pltpu.VMEM((bq, 1), jnp.float32),    # running max m
        pltpu.VMEM((bq, 1), jnp.float32),    # running sum l
        pltpu.VMEM((bq, hd), jnp.float32),   # output accumulator
    ]


# ---------------------------------------------------------------------------
# Layout-preserving flash path (head_dim % 128 == 0): no HBM transposes.
# q/k/v are 128-aligned lane slices of the packed (B, N, 3*H*hd) QKV tensor.
# ---------------------------------------------------------------------------
def flash_attention_qkv(qkv, *, num_heads, head_dim, scale,
                        block_q=256, block_k=256):
    B, N, three_ahd = qkv.shape
    H, hd = num_heads, head_dim
    ahd = H * hd
    assert three_ahd == 3 * ahd and hd % 128 == 0

    bq = _pick_tile(N, block_q, 8)
    bk = _pick_tile(N, block_k, 8)
    Np = _round_up(N, math.lcm(bq, bk))
    if Np != N:
        qkv = jnp.pad(qkv, ((0, 0), (0, Np - N), (0, 0)))

    grid = (B, H, Np // bq, Np // bk)
    kernel = functools.partial(
        _flash_attn_kernel, scale=float(scale), kv_axis=3, block_k=bk,
        seq_len=N, needs_mask=(Np != N))

    out = pl.pallas_call(
        kernel,
        out_shape=jax.ShapeDtypeStruct((B, Np, ahd), qkv.dtype),
        grid_spec=pltpu.PrefetchScalarGridSpec(
            num_scalar_prefetch=0,
            grid=grid,
            in_specs=[
                # q / k / v live at lane offsets 0, AHD, 2*AHD of the packed
                # tensor; block index along the lane dim is in units of hd.
                pl.BlockSpec((None, bq, hd), lambda b, h, qi, ki: (b, qi, h)),
                pl.BlockSpec((None, bk, hd), lambda b, h, qi, ki: (b, ki, H + h)),
                pl.BlockSpec((None, bk, hd), lambda b, h, qi, ki: (b, ki, 2 * H + h)),
            ],
            out_specs=pl.BlockSpec((None, bq, hd), lambda b, h, qi, ki: (b, qi, h)),
            scratch_shapes=_flash_scratch(bq, hd),
        ),
        compiler_params=pltpu.CompilerParams(
            dimension_semantics=("parallel", "parallel", "parallel", "arbitrary"),
            vmem_limit_bytes=_VMEM_LIMIT_BYTES),
    )(qkv, qkv, qkv)
    return out[:, :N, :]                                   # (B, N, H*hd)


# ---------------------------------------------------------------------------
# Fallback flash path for head_dim % 128 != 0 (lane dim = full head_dim).
# ---------------------------------------------------------------------------
def flash_attention_bhnd(q, k, v, *, scale, block_q=256, block_k=256):
    BH, N, hd = q.shape
    bq = _pick_tile(N, block_q, 8)
    bk = _pick_tile(N, block_k, 8)
    Np = _round_up(N, math.lcm(bq, bk))
    if Np != N:
        pad = ((0, 0), (0, Np - N), (0, 0))
        q, k, v = jnp.pad(q, pad), jnp.pad(k, pad), jnp.pad(v, pad)

    grid = (BH, Np // bq, Np // bk)
    kernel = functools.partial(
        _flash_attn_kernel, scale=float(scale), kv_axis=2, block_k=bk,
        seq_len=N, needs_mask=(Np != N))

    out = pl.pallas_call(
        kernel,
        out_shape=jax.ShapeDtypeStruct((BH, Np, hd), q.dtype),
        grid_spec=pltpu.PrefetchScalarGridSpec(
            num_scalar_prefetch=0,
            grid=grid,
            in_specs=[
                pl.BlockSpec((None, bq, hd), lambda b, qi, ki: (b, qi, 0)),
                pl.BlockSpec((None, bk, hd), lambda b, qi, ki: (b, ki, 0)),
                pl.BlockSpec((None, bk, hd), lambda b, qi, ki: (b, ki, 0)),
            ],
            out_specs=pl.BlockSpec((None, bq, hd), lambda b, qi, ki: (b, qi, 0)),
            scratch_shapes=_flash_scratch(bq, hd),
        ),
        compiler_params=pltpu.CompilerParams(
            dimension_semantics=("parallel", "parallel", "arbitrary"),
            vmem_limit_bytes=_VMEM_LIMIT_BYTES),
    )(q, k, v)
    return out[:, :N, :]


# ---------------------------------------------------------------------------
# Tiled matmul + bias kernel (QKV and output projections)
# ---------------------------------------------------------------------------
def _linear_kernel(x_ref, w_ref, b_ref, o_ref, acc_ref):
    @pl.when(pl.program_id(2) == 0)
    def _init():
        acc_ref[...] = jnp.zeros_like(acc_ref)

    acc_ref[...] += jnp.dot(x_ref[...], w_ref[...],
                            preferred_element_type=jnp.float32)

    @pl.when(pl.program_id(2) == pl.num_programs(2) - 1)
    def _finalize():
        o_ref[...] = (acc_ref[...] + b_ref[...]).astype(o_ref.dtype)


def linear(x2d, w, b, *, tm=512, tk=1024, tn=768):
    """x2d: (M, K), w: (K, Nout), b: (Nout,) -> (M, Nout).  f32 accumulation."""
    M, K = x2d.shape
    K2, Nout = w.shape
    assert K == K2
    tm = _pick_tile(M, tm, 8)        # activation rows
    tk = _pick_tile(K, tk, 128)      # full K when K <= 1024
    tn = _pick_tile(Nout, tn, 128)   # wide output tiles -> no re-streaming
    Mp, Kp, Np = _round_up(M, tm), _round_up(K, tk), _round_up(Nout, tn)

    if (Mp, Kp) != (M, K):
        x2d = jnp.pad(x2d, ((0, Mp - M), (0, Kp - K)))
    if (Kp, Np) != (K, Nout):
        w = jnp.pad(w, ((0, Kp - K), (0, Np - Nout)))
    b2d = b.astype(jnp.float32).reshape(1, Nout)
    if Np != Nout:
        b2d = jnp.pad(b2d, ((0, 0), (0, Np - Nout)))

    grid = (Mp // tm, Np // tn, Kp // tk)
    out = pl.pallas_call(
        _linear_kernel,
        out_shape=jax.ShapeDtypeStruct((Mp, Np), x2d.dtype),
        grid_spec=pltpu.PrefetchScalarGridSpec(
            num_scalar_prefetch=0,
            grid=grid,
            in_specs=[
                pl.BlockSpec((tm, tk), lambda i, j, k: (i, k)),
                pl.BlockSpec((tk, tn), lambda i, j, k: (k, j)),
                pl.BlockSpec((1, tn), lambda i, j, k: (0, j)),
            ],
            out_specs=pl.BlockSpec((tm, tn), lambda i, j, k: (i, j)),
            scratch_shapes=[pltpu.VMEM((tm, tn), jnp.float32)],
        ),
        compiler_params=pltpu.CompilerParams(
            dimension_semantics=("parallel", "parallel", "arbitrary"),
            vmem_limit_bytes=_VMEM_LIMIT_BYTES),
    )(x2d, w, b2d)
    if (Mp, Np) != (M, Nout):
        out = out[:M, :Nout]
    return out


# ---------------------------------------------------------------------------
# Attention module (Pallas-backed forward)
# ---------------------------------------------------------------------------
class Attention:
    def __init__(self, dim, num_heads=8, qkv_bias=True, qk_scale=None,
                 attn_drop=0.0, proj_drop=0.0, attn_head_dim=None,
                 use_flash_attn=False, dtype=jnp.float32, *, key):
        del use_flash_attn  # this implementation always uses a fused flash kernel
        self.num_heads = num_heads
        head_dim = dim // num_heads
        if attn_head_dim is not None:
            head_dim = attn_head_dim
        self.head_dim = head_dim
        self.all_head_dim = head_dim * num_heads
        self.scale = qk_scale or head_dim ** (-0.5)
        self.dim = dim
        self.dtype = dtype

        k1, k2, k3, k4, k5 = jax.random.split(key, 5)
        # Weights stored as (in, out) in `dtype` (bf16 supported; f32 accumulation
        # inside the kernels). Biases kept in f32 (added to the f32 accumulator).
        self.w_qkv = (jax.random.normal(k1, (dim, 3 * self.all_head_dim),
                                        jnp.float32) * 0.1).astype(dtype)
        if qkv_bias:
            self.q_bias = jax.random.normal(k2, (self.all_head_dim,), jnp.float32) * 0.1
            self.v_bias = jax.random.normal(k3, (self.all_head_dim,), jnp.float32) * 0.1
        else:
            self.q_bias = None
            self.v_bias = None
        self.w_proj = (jax.random.normal(k4, (self.all_head_dim, dim),
                                         jnp.float32) * 0.1).astype(dtype)
        self.b_proj = jax.random.normal(k5, (dim,), jnp.float32) * 0.1
        # TODO(synk): attn_drop / proj_drop are eval-mode identities (rates
        # default 0.0); in-kernel Bernoulli dropout is not generated.

    def __call__(self, x, attn_mask=None):
        # TODO(synk): attn_mask is ignored — matches the reference's non-flash
        # branch, which never applies it.
        B, N, C = x.shape
        H, hd, ahd = self.num_heads, self.head_dim, self.all_head_dim

        if self.q_bias is not None:
            qkv_b = jnp.concatenate(
                [self.q_bias, jnp.zeros_like(self.v_bias), self.v_bias])
        else:
            qkv_b = jnp.zeros((3 * ahd,), jnp.float32)

        x = x.astype(self.dtype)
        # QKV projection (Pallas tiled matmul + bias, f32 accumulation).
        qkv = linear(x.reshape(B * N, C), self.w_qkv, qkv_b)      # (B*N, 3*AHD)

        if hd % 128 == 0:
            # Layout-preserving flash path: no HBM transposes; head merge is a
            # free reshape of the lane-dense (B, N, H*hd) output.
            o = flash_attention_qkv(qkv.reshape(B, N, 3 * ahd),
                                    num_heads=H, head_dim=hd, scale=self.scale)
            o2d = o.reshape(B * N, ahd)
        else:
            # Fallback for hd not a multiple of 128 (e.g. 64): transposed
            # (B*H, N, hd) layout; output lane dim = full head_dim.
            qkv5 = qkv.reshape(B, N, 3, H, hd).transpose(2, 0, 3, 1, 4)
            q = qkv5[0].reshape(B * H, N, hd)
            k = qkv5[1].reshape(B * H, N, hd)
            v = qkv5[2].reshape(B * H, N, hd)
            o = flash_attention_bhnd(q, k, v, scale=self.scale)    # (B*H, N, hd)
            o = o.reshape(B, H, N, hd).transpose(0, 2, 1, 3)
            o2d = o.reshape(B * N, ahd)

        # Output projection (Pallas tiled matmul + bias).
        out = linear(o2d, self.w_proj, self.b_proj)
        return out.reshape(B, N, C)


# ---------------------------------------------------------------------------
# Demo / self-check
# ---------------------------------------------------------------------------
if __name__ == "__main__":
    def reference_forward(attn, x):
        """Pure-JAX f32 reference with the module's (possibly bf16) params."""
        prec = jax.lax.Precision.HIGHEST
        f32 = jnp.float32
        x = x.astype(f32)
        B, N, C = x.shape
        H, hd = attn.num_heads, attn.head_dim
        qkv_b = jnp.concatenate(
            [attn.q_bias, jnp.zeros_like(attn.v_bias), attn.v_bias])
        qkv = jnp.einsum("bnc,cd->bnd", x, attn.w_qkv.astype(f32),
                         precision=prec) + qkv_b
        qkv = qkv.reshape(B, N, 3, H, hd).transpose(2, 0, 3, 1, 4)
        q, k, v = qkv[0] * attn.scale, qkv[1], qkv[2]
        s = jnp.einsum("bhqd,bhkd->bhqk", q, k, precision=prec)
        p = jax.nn.softmax(s, axis=-1)
        o = jnp.einsum("bhqk,bhkd->bhqd", p, v, precision=prec)
        o = o.transpose(0, 2, 1, 3).reshape(B, N, -1)
        return jnp.einsum("bnd,dc->bnc", o, attn.w_proj.astype(f32),
                          precision=prec) + attn.b_proj

    key = jax.random.PRNGKey(0)
    kx, kp1, kp2, kp3 = jax.random.split(key, 4)
    B, N, C = 2, 10, 32
    x = jax.random.normal(kx, (B, N, C), dtype=jnp.float32)

    # 1) f32, head_dim=128: layout-preserving flash path (lane-sliced QKV);
    #    seq padded 10 -> 16, exercising the in-kernel key mask.
    attn1 = Attention(C, num_heads=2, qkv_bias=True, attn_head_dim=128, key=kp1)
    out1 = jax.block_until_ready(attn1(x))
    ref1 = reference_forward(attn1, x)
    assert out1.shape == (B, N, C) and out1.dtype == jnp.float32
    err1 = jnp.max(jnp.abs(out1 - ref1))
    assert jnp.allclose(out1, ref1, atol=1e-2, rtol=1e-2), f"f32/hd=128 mismatch: {err1}"

    # 2) f32, head_dim=64: fallback (transposed) flash path.
    attn2 = Attention(C, num_heads=2, qkv_bias=True, attn_head_dim=64, key=kp2)
    out2 = jax.block_until_ready(attn2(x))
    ref2 = reference_forward(attn2, x)
    err2 = jnp.max(jnp.abs(out2 - ref2))
    assert jnp.allclose(out2, ref2, atol=1e-2, rtol=1e-2), f"f32/hd=64 mismatch: {err2}"

    # 3) bf16 params/activations (f32 accumulation inside the kernels).
    attn3 = Attention(C, num_heads=2, qkv_bias=True, attn_head_dim=128,
                      dtype=jnp.bfloat16, key=kp3)
    out3 = jax.block_until_ready(attn3(x))
    ref3 = reference_forward(attn3, x)
    assert out3.shape == (B, N, C) and out3.dtype == jnp.bfloat16
    rel = jnp.linalg.norm(out3.astype(jnp.float32) - ref3) / jnp.linalg.norm(ref3)
    assert rel < 5e-2, f"bf16 mismatch: rel={rel}"

    print("KERNEL_OK")
</pallas_src>

<mosaic_0001>
module attributes {stable_mosaic.version = 11 : i64} {
  func.func @_linear_kernel(%arg0: i32, %arg1: i32, %arg2: i32, %arg3: memref<24x128xf32, #tpu.memory_space<vmem>>, %arg4: memref<128x768xf32, #tpu.memory_space<vmem>>, %arg5: memref<1x768xf32, #tpu.memory_space<vmem>>, %arg6: memref<24x768xf32, #tpu.memory_space<vmem>>, %arg7: memref<24x768xf32, #tpu.memory_space<vmem>>) attributes {dimension_semantics = [#tpu.dimension_semantics<parallel>, #tpu.dimension_semantics<parallel>, #tpu.dimension_semantics<arbitrary>], iteration_bounds = array<i64: 1, 1, 1>, scalar_prefetch = 0 : i64, scratch_operands = 1 : i64, tpu.core_type = #tpu.core_type<tc>, window_params = [{transform_indices = @transform_0, window_bounds = array<i64: 24, 128>}, {transform_indices = @transform_1, window_bounds = array<i64: 128, 768>}, {transform_indices = @transform_2, window_bounds = array<i64: 1, 768>}, {transform_indices = @transform_3, window_bounds = array<i64: 24, 768>}]} {
    %c0_i32 = arith.constant 0 : i32
    %0 = arith.cmpi eq, %arg2, %c0_i32 : i32
    %1 = arith.extui %0 : i1 to i32
    %c0_i32_0 = arith.constant 0 : i32
    %2 = arith.cmpi ne, %1, %c0_i32_0 : i32
    scf.if %2 {
      %cst_10 = arith.constant 0.000000e+00 : f32
      %12 = vector.broadcast %cst_10 : f32 to vector<24x768xf32>
      %c0_11 = arith.constant 0 : index
      %c0_12 = arith.constant 0 : index
      %13 = vector.load %arg7[%c0_11, %c0_12] : memref<24x768xf32, #tpu.memory_space<vmem>>, vector<24x768xf32>
      tpu.vector_store %arg7[%c0_11, %c0_12], %12 {strides = array<i32>} : memref<24x768xf32, #tpu.memory_space<vmem>>, vector<24x768xf32>,
    } else {
    }
    %c0 = arith.constant 0 : index
    %c0_1 = arith.constant 0 : index
    %3 = vector.load %arg7[%c0, %c0_1] : memref<24x768xf32, #tpu.memory_space<vmem>>, vector<24x768xf32>
    %c0_2 = arith.constant 0 : index
    %c0_3 = arith.constant 0 : index
    %4 = vector.load %arg3[%c0_2, %c0_3] : memref<24x128xf32, #tpu.memory_space<vmem>>, vector<24x128xf32>
    %c0_4 = arith.constant 0 : index
    %c0_5 = arith.constant 0 : index
    %5 = vector.load %arg4[%c0_4, %c0_5] : memref<128x768xf32, #tpu.memory_space<vmem>>, vector<128x768xf32>
    %cst = arith.constant dense<0.000000e+00> : vector<24x768xf32>
    %6 = tpu.matmul %4, %5, %cst {dimension_numbers = #tpu.dot_dimension_numbers<[1], [0], [0], [1], [0, 0, 1, 1], [], []>} : vector<24x128xf32>, vector<128x768xf32>, vector<24x768xf32> -> vector<24x768xf32>
    %7 = arith.addf %3, %6 : vector<24x768xf32>
    %c0_6 = arith.constant 0 : index
    %c0_7 = arith.constant 0 : index
    %8 = vector.load %arg7[%c0_6, %c0_7] : memref<24x768xf32, #tpu.memory_space<vmem>>, vector<24x768xf32>
    tpu.vector_store %arg7[%c0_6, %c0_7], %7 {strides = array<i32>} : memref<24x768xf32, #tpu.memory_space<vmem>>, vector<24x768xf32>,
    %c0_i32_8 = arith.constant 0 : i32
    %9 = arith.cmpi eq, %arg2, %c0_i32_8 : i32
    %10 = arith.extui %9 : i1 to i32
    %c0_i32_9 = arith.constant 0 : i32
    %11 = arith.cmpi ne, %10, %c0_i32_9 : i32
    scf.if %11 {
      %c0_10 = arith.constant 0 : index
      %c0_11 = arith.constant 0 : index
      %12 = vector.load %arg7[%c0_10, %c0_11] : memref<24x768xf32, #tpu.memory_space<vmem>>, vector<24x768xf32>
      %c0_12 = arith.constant 0 : index
      %c0_13 = arith.constant 0 : index
      %13 = vector.load %arg5[%c0_12, %c0_13] : memref<1x768xf32, #tpu.memory_space<vmem>>, vector<1x768xf32>
      %14 = vector.broadcast %13 : vector<1x768xf32> to vector<24x768xf32>
      %15 = arith.addf %12, %14 : vector<24x768xf32>
      %c0_14 = arith.constant 0 : index
      %c0_15 = arith.constant 0 : index
      %16 = vector.load %arg6[%c0_14, %c0_15] : memref<24x768xf32, #tpu.memory_space<vmem>>, vector<24x768xf32>
      tpu.vector_store %arg6[%c0_14, %c0_15], %15 {strides = array<i32>} : memref<24x768xf32, #tpu.memory_space<vmem>>, vector<24x768xf32>,
    } else {
    }
    return
  }
  func.func @transform_0(%arg0: i32, %arg1: i32, %arg2: i32) -> (i32, i32) {
    %c0_i32 = arith.constant 0 : i32
    return %arg0, %arg2 : i32, i32
  }
  func.func @transform_1(%arg0: i32, %arg1: i32, %arg2: i32) -> (i32, i32) {
    %c0_i32 = arith.constant 0 : i32
    return %arg2, %arg1 : i32, i32
  }
  func.func @transform_2(%arg0: i32, %arg1: i32, %arg2: i32) -> (i32, i32) {
    %c0_i32 = arith.constant 0 : i32
    %c0_i32_0 = arith.constant 0 : i32
    return %c0_i32, %arg1 : i32, i32
  }
  func.func @transform_3(%arg0: i32, %arg1: i32, %arg2: i32) -> (i32, i32) {
    %c0_i32 = arith.constant 0 : i32
    return %arg0, %arg1 : i32, i32
  }
}

</mosaic_0001>

<bundles_post_ra>
// kernel: tpu_custom_call.1
= control target key start
LH: loop header
LB: loop body
LE: loop exit
PB: predicated region body
PF: predicated region fallthrough
CT: control target
= control target key end

     0   :  { %8 = vsyncpa [#allocation4], 0  ;;  %s858_s0 = inlined_call_operand.hbm [shape: f32[24,128], index: 0, kind: input, shape index: {}]   ;;  %s859_s1 = inlined_call_operand.hbm [shape: f32[128,768], index: 1, kind: input, shape index: {}]   ;;  %s860_s2 = inlined_call_operand.vmem [shape: f32[1,768], index: 2, kind: input, shape index: {}]   ;;  %s861_s3 = inlined_call_operand.hbm [shape: f32[24,768], index: 3, kind: output, shape index: {}]  }
   0x1   :  { %9 = vsyncpa [#allocation7], 0 }
   0x2   :  { %10 = vsyncpa [#allocation5], 0  ;;  %s766_s12 = smov [#allocation3]   ;;  %s694_s16 = scalar_lea.hbm %s858_s0, 384 }
   0x3   :  { %s16_s13 = sshll.u32 %s766_s12, 4  ;;  %p695_p0 = scmp.ne.s32.totalorder %s858_s0, %s694_s16  ;;  %s17_s13 = int_to_ptr.vmem [resolvable:$true] %s16_s13 }
   0x4   :  { %p698_p1 = scmp.lt.u32.totalorder %s694_s16, %s858_s0 }
   0x6   :  { %p700_p2 = pnand %p698_p1, %p695_p0 }
   0x8   :  { %703 = shalt.err (!%p700_p2)
}
   0x9   :  { %s704_s21 = scalar_lea.vmem %s17_s13, 384  ;;  %p709_p4 = scmp.lt.s32.totalorder %s17_s13, %s17_s13 }
   0xa   :  { %p705_p3 = scmp.ne.s32.totalorder %s17_s13, %s704_s21  ;;  %p710_p5 = scmp.lt.s32.totalorder %s704_s21, %s704_s21 }
   0xc   :  { %p711_p6 = por %p710_p5, %p709_p4 }
   0xe   :  { %p712_p7 = pnand %p711_p6, %p705_p3 }
  0x10   :  { %715 = shalt.err (!%p712_p7)
}
  0x11   :  { %s767_s22 = smov 128   ;;  %s768_s23 = smov 8  }
  0x12   :  { %22 = dma.hbm_to_vmem [thread:$0]  %s858_s0, 384, %s17_s13, [#allocation4], %s767_s22, %s767_s22, %s768_s23  }
  0x13   :  { %s769_s26 = smov [#allocation6]   ;;  %s716_s30 = scalar_lea.hbm %s859_s1, 12288 }
  0x14   :  { %s28_s27 = sshll.u32 %s769_s26, 4  ;;  %p717_p8 = scmp.ne.s32.totalorder %s859_s1, %s716_s30  ;;  %s29_s27 = int_to_ptr.vmem [resolvable:$true] %s28_s27 }
  0x15   :  { %p720_p9 = scmp.lt.u32.totalorder %s716_s30, %s859_s1 }
  0x17   :  { %p722_p10 = pnand %p720_p9, %p717_p8 }
  0x19   :  { %725 = shalt.err (!%p722_p10)
}
  0x1a   :  { %s726_s8 = scalar_lea.vmem %s29_s27, 12288  ;;  %p731_p12 = scmp.lt.s32.totalorder %s29_s27, %s29_s27 }
  0x1b   :  { %p727_p11 = scmp.ne.s32.totalorder %s29_s27, %s726_s8  ;;  %p732_p13 = scmp.lt.s32.totalorder %s726_s8, %s726_s8 }
  0x1d   :  { %p733_p0 = por %p732_p13, %p731_p12 }
  0x1f   :  { %p734_p1 = pnand %p733_p0, %p727_p11 }
  0x21   :  { %737 = shalt.err (!%p734_p1)
}
  0x22   :  { %s770_s0 = smov 768   ;;  %s771_s9 = smov 48  }
  0x23   :  { %34 = dma.hbm_to_vmem [thread:$0]  %s859_s1, 12288, %s29_s27, [#allocation7], %s770_s0, %s770_s0, %s771_s9  }
  0x24   :  { %760 = dma.done.wait [#allocation4], 384  }
  0x25   :  { %761 = vsyncadd [#allocation4], 4294966912 }
  0x26   :  { %762 = dma.done.wait [#allocation7], 12288  }
  0x27   :  { %763 = vsyncadd [#allocation7], 4294955008  ;;  %v772_v0 = vmov 0.0   ;;  %v89_v1 = vld [vmem:[#allocation6 + $0x18] sm:$0xff]  ;;  %v95_v2 = vld [vmem:[#allocation6 + $0x48] sm:$0xff] }
  0x28   :  { %329 = vmatprep.mubr.f32.mxu1 %v772_v0  ;;  %246 = vmatprep.mubr.f32.mxu0 %v772_v0  ;;  %v88_v3 = vld [vmem:[#allocation6 + $0x10] sm:$0xff]  ;;  %v606_v4 = vpack.c.bf16 %v95_v2, %v89_v1  ;;  %v94_v5 = vld [vmem:[#allocation6 + $0x40] sm:$0xff]  ;;  %v87_v6 = vld [vmem:[#allocation6 + $0x8] sm:$0xff] }
  0x29   :  { %v93_v7 = vld [vmem:[#allocation6 + $0x38] sm:$0xff]  ;;  %v608_v8 = vpack.c.bf16 %v94_v5, %v88_v3  ;;  %v86_v10 = vld [vmem:[#allocation6] sm:$0xff]  ;;  %v92_v11 = vld [vmem:[#allocation6 + $0x30] sm:$0xff] }
  0x2a   :  { %v574_v9 = vpack.c.bf16 %v93_v7, %v87_v6  ;;  %v101_v12 = vld [vmem:[#allocation6 + $0x78] sm:$0xff]  ;;  %607 = vmatprep.subr.bf16.mxu1 %v606_v4  ;;  %v576_v13 = vpack.c.bf16 %v92_v11, %v86_v10  ;;  %v107_v14 = vld [vmem:[#allocation6 + $0xa8] sm:$0xff]  ;;  %v100_v15 = vld [vmem:[#allocation6 + $0x70] sm:$0xff] }
  0x2b   :  { %v106_v16 = vld [vmem:[#allocation6 + $0xa0] sm:$0xff]  ;;  %609 = vmatpush1.bf16.msra.mxu1 %v608_v8  ;;  %v610_v17 = vpack.c.bf16 %v107_v14, %v101_v12  ;;  %v99_v19 = vld [vmem:[#allocation6 + $0x68] sm:$0xff]  ;;  %v105_v20 = vld [vmem:[#allocation6 + $0x98] sm:$0xff] }
  0x2c   :  { %575 = vmatprep.subr.bf16.mxu0 %v574_v9  ;;  %v612_v18 = vpack.c.bf16 %v106_v16, %v100_v15  ;;  %v98_v21 = vld [vmem:[#allocation6 + $0x60] sm:$0xff]  ;;  %v578_v22 = vpack.c.bf16 %v105_v20, %v99_v19  ;;  %v104_v23 = vld [vmem:[#allocation6 + $0x90] sm:$0xff]  ;;  %v113_v24 = vld [vmem:[#allocation6 + $0xd8] sm:$0xff] }
  0x2d   :  { %577 = vmatpush1.bf16.msra.mxu0 %v576_v13  ;;  %v119_v25 = vld [vmem:[#allocation6 + $0x108] sm:$0xff]  ;;  %611 = vmatprep.subr.bf16.mxu1 %v610_v17  ;;  %v580_v26 = vpack.c.bf16 %v104_v23, %v98_v21  ;;  %v112_v28 = vld [vmem:[#allocation6 + $0xd0] sm:$0xff]  ;;  %v118_v29 = vld [vmem:[#allocation6 + $0x100] sm:$0xff] }
  0x2e   :  { %v614_v27 = vpack.c.bf16 %v119_v25, %v113_v24  ;;  %v111_v30 = vld [vmem:[#allocation6 + $0xc8] sm:$0xff]  ;;  %579 = vmatprep.subr.bf16.mxu0 %v578_v22  ;;  %v117_v31 = vld [vmem:[#allocation6 + $0xf8] sm:$0xff]  ;;  %v110_v32 = vld [vmem:[#allocation6 + $0xc0] sm:$0xff]  ;;  %v616_v34 = vpack.c.bf16 %v118_v29, %v112_v28 }
  0x2f   :  { %v116_v33 = vld [vmem:[#allocation6 + $0xf0] sm:$0xff]  ;;  %613 = vmatpush1.bf16.msra.mxu1 %v612_v18  ;;  %v582_v35 = vpack.c.bf16 %v117_v31, %v111_v30  ;;  %v125_v36 = vld [vmem:[#allocation6 + $0x138] sm:$0xff]  ;;  %v131_v37 = vld [vmem:[#allocation6 + $0x168] sm:$0xff] }
  0x30   :  { %v124_v38 = vld [vmem:[#allocation6 + $0x130] sm:$0xff]  ;;  %615 = vmatprep.subr.bf16.mxu1 %v614_v27  ;;  %v584_v39 = vpack.c.bf16 %v116_v33, %v110_v32  ;;  %v618_v40 = vpack.c.bf16 %v131_v37, %v125_v36  ;;  %v130_v41 = vld [vmem:[#allocation6 + $0x160] sm:$0xff]  ;;  %v123_v42 = vld [vmem:[#allocation6 + $0x128] sm:$0xff] }
  0x31   :  { %581 = vmatpush1.bf16.msra.mxu0 %v580_v26  ;;  %v129_v43 = vld [vmem:[#allocation6 + $0x158] sm:$0xff]  ;;  %v122_v45 = vld [vmem:[#allocation6 + $0x120] sm:$0xff]  ;;  %v128_v46 = vld [vmem:[#allocation6 + $0x150] sm:$0xff]  ;;  %v620_v49 = vpack.c.bf16 %v130_v41, %v124_v38 }
  0x32   :  { %583 = vmatprep.subr.bf16.mxu0 %v582_v35  ;;  %v586_v44 = vpack.c.bf16 %v129_v43, %v123_v42  ;;  %v137_v47 = vld [vmem:[#allocation6 + $0x198] sm:$0xff]  ;;  %v143_v48 = vld [vmem:[#allocation6 + $0x1c8] sm:$0xff]  ;;  %v588_v52 = vpack.c.bf16 %v128_v46, %v122_v45  ;;  %v136_v54 = vld [vmem:[#allocation6 + $0x190] sm:$0xff] }
  0x33   :  { %617 = vmatpush1.bf16.msra.mxu1 %v616_v34  ;;  %v135_v50 = vld [vmem:[#allocation6 + $0x188] sm:$0xff]  ;;  %v141_v51 = vld [vmem:[#allocation6 + $0x1b8] sm:$0xff]  ;;  %v622_v53 = vpack.c.bf16 %v143_v48, %v137_v47  ;;  %v142_v55 = vld [vmem:[#allocation6 + $0x1c0] sm:$0xff] }
  0x34   :  { %619 = vmatprep.subr.bf16.mxu1 %v618_v40  ;;  %v134_v56 = vld [vmem:[#allocation6 + $0x180] sm:$0xff]  ;;  %v590_v57 = vpack.c.bf16 %v141_v51, %v135_v50  ;;  %v140_v58 = vld [vmem:[#allocation6 + $0x1b0] sm:$0xff]  ;;  %v149_v59 = vld [vmem:[#allocation6 + $0x1f8] sm:$0xff]  ;;  %v624_v63 = vpack.c.bf16 %v142_v55, %v136_v54 }
  0x35   :  { %585 = vmatpush1.bf16.msra.mxu0 %v584_v39  ;;  %v155_v60 = vld [vmem:[#allocation6 + $0x228] sm:$0xff]  ;;  %v153_v62 = vld [vmem:[#allocation6 + $0x218] sm:$0xff]  ;;  %v592_v1 = vpack.c.bf16 %v140_v58, %v134_v56  ;;  %v148_v3 = vld [vmem:[#allocation6 + $0x1f0] sm:$0xff] }
  0x36   :  { %587 = vmatprep.subr.bf16.mxu0 %v586_v44  ;;  %v147_v61 = vld [vmem:[#allocation6 + $0x1e8] sm:$0xff]  ;;  %v626_v2 = vpack.c.bf16 %v155_v60, %v149_v59  ;;  %v154_v4 = vld [vmem:[#allocation6 + $0x220] sm:$0xff]  ;;  %v152_v7 = vld [vmem:[#allocation6 + $0x210] sm:$0xff] }
  0x37   :  { %621 = vmatpush1.bf16.msra.mxu1 %v620_v49  ;;  %v146_v5 = vld [vmem:[#allocation6 + $0x1e0] sm:$0xff]  ;;  %v594_v6 = vpack.c.bf16 %v153_v62, %v147_v61  ;;  %v161_v8 = vld [vmem:[#allocation6 + $0x258] sm:$0xff]  ;;  %v167_v9 = vld [vmem:[#allocation6 + $0x288] sm:$0xff]  ;;  %v628_v12 = vpack.c.bf16 %v154_v4, %v148_v3 }
  0x38   :  { %623 = vmatprep.subr.bf16.mxu1 %v622_v53  ;;  %v159_v10 = vld [vmem:[#allocation6 + $0x248] sm:$0xff]  ;;  %v165_v11 = vld [vmem:[#allocation6 + $0x278] sm:$0xff]  ;;  %v596_v13 = vpack.c.bf16 %v152_v7, %v146_v5  ;;  %v630_v14 = vpack.c.bf16 %v167_v9, %v161_v8  ;;  %v160_v15 = vld [vmem:[#allocation6 + $0x250] sm:$0xff] }
  0x39   :  { %589 = vmatpush1.bf16.msra.mxu0 %v588_v52  ;;  %v166_v16 = vld [vmem:[#allocation6 + $0x280] sm:$0xff]  ;;  %v598_v18 = vpack.c.bf16 %v165_v11, %v159_v10  ;;  %v164_v19 = vld [vmem:[#allocation6 + $0x270] sm:$0xff]  ;;  %v173_v20 = vld [vmem:[#allocation6 + $0x2b8] sm:$0xff] }
  0x3a   :  { %591 = vmatprep.subr.bf16.mxu0 %v590_v57  ;;  %v158_v17 = vld [vmem:[#allocation6 + $0x240] sm:$0xff]  ;;  %v179_v21 = vld [vmem:[#allocation6 + $0x2e8] sm:$0xff]  ;;  %v177_v23 = vld [vmem:[#allocation6 + $0x2d8] sm:$0xff]  ;;  %v632_v24 = vpack.c.bf16 %v166_v16, %v160_v15 }
  0x3b   :  { %625 = vmatpush1.bf16.msra.mxu1 %v624_v63  ;;  %v171_v22 = vld [vmem:[#allocation6 + $0x2a8] sm:$0xff]  ;;  %v600_v25 = vpack.c.bf16 %v164_v19, %v158_v17  ;;  %v634_v26 = vpack.c.bf16 %v179_v21, %v173_v20  ;;  %v172_v27 = vld [vmem:[#allocation6 + $0x2b0] sm:$0xff]  ;;  %v178_v28 = vld [vmem:[#allocation6 + $0x2e0] sm:$0xff] }
  0x3c   :  { %627 = vmatprep.subr.bf16.mxu1 %v626_v2  ;;  %v170_v29 = vld [vmem:[#allocation6 + $0x2a0] sm:$0xff]  ;;  %v602_v30 = vpack.c.bf16 %v177_v23, %v171_v22  ;;  %v176_v31 = vld [vmem:[#allocation6 + $0x2d0] sm:$0xff]  ;;  %v91_v32 = vld [vmem:[#allocation6 + $0x28] sm:$0xff]  ;;  %v636_v34 = vpack.c.bf16 %v178_v28, %v172_v27  ;;  %v490_v22 = vlaneseq }
  0x3d   :  { %593 = vmatpush1.bf16.msra.mxu0 %v592_v1  ;;  %v97_v33 = vld [vmem:[#allocation6 + $0x58] sm:$0xff]  ;;  %v604_v35 = vpack.c.bf16 %v176_v31, %v170_v29  ;;  %v90_v37 = vld [vmem:[#allocation6 + $0x20] sm:$0xff]  ;;  %v96_v38 = vld [vmem:[#allocation6 + $0x50] sm:$0xff] }
  0x3e   :  { %595 = vmatprep.subr.bf16.mxu0 %v594_v6  ;;  %v638_v36 = vpack.c.bf16 %v97_v33, %v91_v32  ;;  %v103_v39 = vld [vmem:[#allocation6 + $0x88] sm:$0xff]  ;;  %v109_v40 = vld [vmem:[#allocation6 + $0xb8] sm:$0xff]  ;;  %v640_v42 = vpack.c.bf16 %v96_v38, %v90_v37  ;;  %v102_v44 = vld [vmem:[#allocation6 + $0x80] sm:$0xff]  ;;  %v491_v23 = vshrl.u32 %v490_v22, 7 }
  0x3f   :  { %629 = vmatpush1.bf16.msra.mxu1 %v628_v12  ;;  %v823_v41 = vld [vmem:[#allocation3] sm:$0xff]  ;;  %v642_v43 = vpack.c.bf16 %v109_v40, %v103_v39  ;;  %v108_v45 = vld [vmem:[#allocation6 + $0xb0] sm:$0xff]  ;;  %v121_v47 = vld [vmem:[#allocation6 + $0x118] sm:$0xff] }
  0x40   :  { %631 = vmatprep.subr.bf16.mxu1 %v630_v14  ;;  %v115_v46 = vld [vmem:[#allocation6 + $0xe8] sm:$0xff]  ;;  %v644_v48 = vpack.c.bf16 %v108_v45, %v102_v44  ;;  %v827_v49 = vld [vmem:[#allocation3 + $0x8] sm:$0xff]  ;;  %v114_v51 = vld [vmem:[#allocation6 + $0xe0] sm:$0xff]  ;;  %v492_v27 = vsub.s32 0, %v491_v23  ;;  %v496_v28 = vsub.s32 1, %v491_v23 }
  0x41   :  { %597 = vmatpush1.bf16.msra.mxu0 %v596_v13  ;;  %v646_v50 = vpack.c.bf16 %v121_v47, %v115_v46  ;;  %v120_v52 = vld [vmem:[#allocation6 + $0x110] sm:$0xff]  ;;  %v127_v53 = vld [vmem:[#allocation6 + $0x148] sm:$0xff]  ;;  %v133_v54 = vld [vmem:[#allocation6 + $0x178] sm:$0xff] }
  0x42   :  { %599 = vmatprep.subr.bf16.mxu0 %v598_v18  ;;  %v648_v55 = vpack.c.bf16 %v120_v52, %v114_v51  ;;  %v85_v56 = vld [vmem:[#allocation3 + $0x10] sm:$0xff]  ;;  %v650_v57 = vpack.c.bf16 %v133_v54, %v127_v53  ;;  %v126_v58 = vld [vmem:[#allocation6 + $0x140] sm:$0xff]  ;;  %v132_v59 = vld [vmem:[#allocation6 + $0x170] sm:$0xff] }
  0x43   :  { %633 = vmatpush1.bf16.msra.mxu1 %v632_v24  ;;  %v139_v60 = vld [vmem:[#allocation6 + $0x1a8] sm:$0xff]  ;;  %v145_v61 = vld [vmem:[#allocation6 + $0x1d8] sm:$0xff]  ;;  %v652_v62 = vpack.c.bf16 %v132_v59, %v126_v58  ;;  %v138_v1 = vld [vmem:[#allocation6 + $0x1a0] sm:$0xff]  ;;  %v500_v24 = vsub.s32 2, %v491_v23 }
  0x44   :  { %635 = vmatprep.subr.bf16.mxu1 %v634_v26  ;;  %v654_v63 = vpack.c.bf16 %v145_v61, %v139_v60  ;;  %v144_v2 = vld [vmem:[#allocation6 + $0x1d0] sm:$0xff]  ;;  %v151_v3 = vld [vmem:[#allocation6 + $0x208] sm:$0xff]  ;;  %v157_v4 = vld [vmem:[#allocation6 + $0x238] sm:$0xff]  ;;  %v504_v26 = vsub.s32 3, %v491_v23 }
  0x45   :  { %601 = vmatpush1.bf16.msra.mxu0 %v600_v25  ;;  %v656_v5 = vpack.c.bf16 %v144_v2, %v138_v1  ;;  %v658_v6 = vpack.c.bf16 %v157_v4, %v151_v3  ;;  %v150_v7 = vld [vmem:[#allocation6 + $0x200] sm:$0xff]  ;;  %v156_v8 = vld [vmem:[#allocation6 + $0x230] sm:$0xff]  ;;  %v163_v9 = vld [vmem:[#allocation6 + $0x268] sm:$0xff] }
  0x46   :  { %603 = vmatprep.subr.bf16.mxu0 %v602_v30  ;;  %v169_v10 = vld [vmem:[#allocation6 + $0x298] sm:$0xff]  ;;  %v660_v11 = vpack.c.bf16 %v156_v8, %v150_v7  ;;  %v162_v13 = vld [vmem:[#allocation6 + $0x260] sm:$0xff]  ;;  %v168_v14 = vld [vmem:[#allocation6 + $0x290] sm:$0xff] }
  0x47   :  { %637 = vmatpush1.bf16.msra.mxu1 %v636_v34  ;;  %v662_v12 = vpack.c.bf16 %v169_v10, %v163_v9  ;;  %v175_v15 = vld [vmem:[#allocation6 + $0x2c8] sm:$0xff]  ;;  %v181_v16 = vld [vmem:[#allocation6 + $0x2f8] sm:$0xff]  ;;  %v664_v17 = vpack.c.bf16 %v168_v14, %v162_v13  ;;  %v174_v19 = vld [vmem:[#allocation6 + $0x2c0] sm:$0xff] }
  0x48   :  { %670 = vmatprep.subr.bf16.mxu1 %v638_v36  ;;  %v666_v18 = vpack.c.bf16 %v181_v16, %v175_v15  ;;  %v180_v20 = vld [vmem:[#allocation6 + $0x2f0] sm:$0xff]  ;;  %v488_v25 = vld [vmem:[%s860_s2] sm:$0x3f]  ;;  %s773_s2 = smov [#allocation8]  }
  0x49   :  { %605 = vmatpush1.bf16.msra.mxu0 %v604_v35  ;;  %v668_v21 = vpack.c.bf16 %v180_v20, %v174_v19  ;;  %v501_v29 = vrot.slane %v488_v25, %v500_v24  ;;  %v505_v30 = vrot.slane %v488_v25, %v504_v26  ;;  %v493_v31 = vrot.slane %v488_v25, %v492_v27  ;;  %s561_s13 = sshll.u32 %s773_s2, 4  ;;  %s562_s13 = int_to_ptr.vmem [resolvable:$true] %s561_s13 }
  0x4a   :  { %639 = vmatprep.subr.bf16.mxu0 %v638_v36  ;;  %330 = vmatmul.mubr.f32.vlgmr.msra.gmra.mrb[0].mxu1 %v823_v41  ;;  %v497_v32 = vrot.slane %v488_v25, %v496_v28  ;;  %s738_s14 = scalar_lea.vmem %s562_s13, 2304  ;;  %p743_p3 = scmp.lt.s32.totalorder %s562_s13, %s562_s13 }
  0x4b   :  { %678 = vmatpush1.bf16.msra.mxu1 %v640_v42  ;;  %335 = vmatprep.mubr.f32.mxu1 %v772_v0  ;;  %p739_p2 = scmp.ne.s32.totalorder %s562_s13, %s738_s14  ;;  %p744_p4 = scmp.lt.s32.totalorder %s738_s14, %s738_s14 }
  0x4c   :  { %247 = vmatmul.mubr.f32.vlgmr.msra.gmra.mrb[0].mxu0 %v823_v41  ;;  %671 = vmatprep.subr.bf16.mxu1 %v642_v43 }
  0x4d   :  { %641 = vmatpush1.bf16.msra.mxu0 %v640_v42  ;;  %252 = vmatprep.mubr.f32.mxu0 %v772_v0  ;;  %p745_p5 = por %p744_p4, %p743_p3 }
  0x4e   :  { %643 = vmatprep.subr.bf16.mxu0 %v642_v43  ;;  %336 = vmatmul.mubr.f32.gmra.mrb[2].mxu1 %v827_v49 }
  0x4f   :  { %679 = vmatpush1.bf16.msra.mxu1 %v644_v48  ;;  %341 = vmatprep.mubr.f32.mxu1 %v772_v0  ;;  %p746_p6 = pnand %p745_p5, %p739_p2 }
  0x50   :  { %672 = vmatprep.subr.bf16.mxu1 %v646_v50  ;;  %253 = vmatmul.mubr.f32.gmra.mrb[2].mxu0 %v827_v49 }
  0x51   :  { %645 = vmatpush1.bf16.msra.mxu0 %v644_v48  ;;  %258 = vmatprep.mubr.f32.mxu0 %v772_v0 }
  0x52   :  { %647 = vmatprep.subr.bf16.mxu0 %v646_v50  ;;  %342 = vmatmul.mubr.f32.gmra.mrb[4].mxu1 %v85_v56 }
  0x53   :  { %680 = vmatpush1.bf16.msra.mxu1 %v648_v55  ;;  %418 = vmatprep.mubr.f32.mxu1 %v772_v0 }
  0x54   :  { %673 = vmatprep.subr.bf16.mxu1 %v650_v57  ;;  %259 = vmatmul.mubr.f32.gmra.mrb[4].mxu0 %v85_v56 }
  0x55   :  { %649 = vmatpush1.bf16.msra.mxu0 %v648_v55  ;;  %412 = vmatprep.mubr.f32.mxu0 %v772_v0 }
  0x56   :  { %651 = vmatprep.subr.bf16.mxu0 %v650_v57  ;;  %v512_v57 = vsub.s32 5, %v491_v23 }
  0x57   :  { %681 = vmatpush1.bf16.msra.mxu1 %v652_v62 }
  0x58   :  { %674 = vmatprep.subr.bf16.mxu1 %v654_v63  ;;  %v513_v59 = vrot.slane %v488_v25, %v512_v57 }
  0x59   :  { %653 = vmatpush1.bf16.msra.mxu0 %v652_v62 }
  0x5a   :  { %655 = vmatprep.subr.bf16.mxu0 %v654_v63 }
  0x5b   :  { %682 = vmatpush1.bf16.msra.mxu1 %v656_v5 }
  0x5c   :  { %675 = vmatprep.subr.bf16.mxu1 %v658_v6 }
  0x5d   :  { %657 = vmatpush1.bf16.msra.mxu0 %v656_v5 }
  0x5e   :  { %659 = vmatprep.subr.bf16.mxu0 %v658_v6 }
  0x5f   :  { %683 = vmatpush1.bf16.msra.mxu1 %v660_v11 }
  0x60   :  { %676 = vmatprep.subr.bf16.mxu1 %v662_v12 }
  0x61   :  { %661 = vmatpush1.bf16.msra.mxu0 %v660_v11 }
  0x62   :  { %663 = vmatprep.subr.bf16.mxu0 %v662_v12 }
  0x63   :  { %684 = vmatpush1.bf16.msra.mxu1 %v664_v17 }
  0x64   :  { %677 = vmatprep.subr.bf16.mxu1 %v666_v18 }
  0x65   :  { %665 = vmatpush1.bf16.msra.mxu0 %v664_v17 }
  0x66   :  { %667 = vmatprep.subr.bf16.mxu0 %v666_v18 }
  0x67   :  { %685 = vmatpush1.bf16.msra.mxu1 %v668_v21 }
  0x69   :  { %669 = vmatpush1.bf16.msra.mxu0 %v668_v21 }
  0x6a   :  { %419 = vmatmul.mubr.f32.vlgmr.msra.gmra.mrb[6].mxu1 %v827_v49 }
  0x6b   :  { %424 = vmatprep.mubr.f32.mxu1 %v772_v0 }
  0x6c   :  { %413 = vmatmul.mubr.f32.vlgmr.msra.gmra.mrb[6].mxu0 %v823_v41 }
  0x6e   :  { %425 = vmatmul.mubr.f32.gmra.mrb[8].mxu1 %v85_v56  ;;  %v508_v56 = vsub.s32 4, %v491_v23 }
  0x70   :  { %v509_v58 = vrot.slane %v488_v25, %v508_v56 }
 0x11d   :  { %v331_v33 = vpop.f32.mrb[0].mxu1 }
 0x11e   :  { %v522_v34 = vadd.f32 %v501_v29, %v331_v33  ;;  %v333_v35 = vpop.f32.mrb[1].mxu1 }
 0x11f   :  { %v248_v36 = vpop.f32.mrb[0].mxu0  ;;  %v523_v0 = vadd.f32 %v505_v30, %v333_v35 }
 0x120   :  { %v520_v37 = vadd.f32 %v493_v31, %v248_v36  ;;  %v250_v38 = vpop.f32.mrb[1].mxu0  ;;  %540 = vst [vmem:[#allocation8 + $0x10] sm:$0xff] %v522_v34 }
 0x121   :  { %v521_v39 = vadd.f32 %v497_v32, %v250_v38  ;;  %541 = vst [vmem:[#allocation8 + $0x18] sm:$0xff] %v523_v0  ;;  %v337_v40 = vpop.f32.mrb[2].mxu1 }
 0x122   :  { %538 = vst [vmem:[#allocation8] sm:$0xff] %v520_v37  ;;  %v528_v41 = vadd.f32 %v501_v29, %v337_v40  ;;  %v339_v42 = vpop.f32.mrb[3].mxu1 }
 0x123   :  { %539 = vst [vmem:[#allocation8 + $0x8] sm:$0xff] %v521_v39  ;;  %v529_v43 = vadd.f32 %v505_v30, %v339_v42  ;;  %v254_v44 = vpop.f32.mrb[2].mxu0 }
 0x124   :  { %546 = vst [vmem:[#allocation8 + $0x40] sm:$0xff] %v528_v41  ;;  %v526_v45 = vadd.f32 %v493_v31, %v254_v44  ;;  %v256_v47 = vpop.f32.mrb[3].mxu0 }
 0x125   :  { %547 = vst [vmem:[#allocation8 + $0x48] sm:$0xff] %v529_v43  ;;  %v343_v46 = vpop.f32.mrb[4].mxu1  ;;  %v527_v49 = vadd.f32 %v497_v32, %v256_v47 }
 0x126   :  { %v534_v48 = vadd.f32 %v501_v29, %v343_v46  ;;  %v345_v50 = vpop.f32.mrb[5].mxu1  ;;  %544 = vst [vmem:[#allocation8 + $0x30] sm:$0xff] %v526_v45 }
 0x127   :  { %v535_v51 = vadd.f32 %v505_v30, %v345_v50  ;;  %545 = vst [vmem:[#allocation8 + $0x38] sm:$0xff] %v527_v49  ;;  %v260_v52 = vpop.f32.mrb[4].mxu0 }
 0x128   :  { %552 = vst [vmem:[#allocation8 + $0x70] sm:$0xff] %v534_v48  ;;  %v532_v53 = vadd.f32 %v493_v31, %v260_v52  ;;  %v262_v54 = vpop.f32.mrb[5].mxu0 }
 0x129   :  { %553 = vst [vmem:[#allocation8 + $0x78] sm:$0xff] %v535_v51  ;;  %v533_v55 = vadd.f32 %v497_v32, %v262_v54 }
 0x12a   :  { %550 = vst [vmem:[#allocation8 + $0x60] sm:$0xff] %v532_v53 }
 0x12b   :  { %551 = vst [vmem:[#allocation8 + $0x68] sm:$0xff] %v533_v55 }
 0x13d   :  { %v420_v60 = vpop.f32.mrb[6].mxu1 }
 0x13e   :  { %v530_v61 = vadd.f32 %v509_v58, %v420_v60  ;;  %v422_v62 = vpop.f32.mrb[7].mxu1 }
 0x13f   :  { %v414_v63 = vpop.f32.mrb[6].mxu0  ;;  %v531_v1 = vadd.f32 %v513_v59, %v422_v62 }
 0x140   :  { %v524_v2 = vadd.f32 %v509_v58, %v414_v63  ;;  %v416_v3 = vpop.f32.mrb[7].mxu0  ;;  %548 = vst [vmem:[#allocation8 + $0x50] sm:$0xff] %v530_v61 }
 0x141   :  { %v525_v4 = vadd.f32 %v513_v59, %v416_v3  ;;  %549 = vst [vmem:[#allocation8 + $0x58] sm:$0xff] %v531_v1  ;;  %v426_v5 = vpop.f32.mrb[8].mxu1 }
 0x142   :  { %542 = vst [vmem:[#allocation8 + $0x20] sm:$0xff] %v524_v2  ;;  %v536_v6 = vadd.f32 %v509_v58, %v426_v5  ;;  %v428_v7 = vpop.f32.mrb[9].mxu1 }
 0x143   :  { %543 = vst [vmem:[#allocation8 + $0x28] sm:$0xff] %v525_v4  ;;  %v537_v8 = vadd.f32 %v513_v59, %v428_v7 }
 0x144   :  { %554 = vst [vmem:[#allocation8 + $0x80] sm:$0xff] %v536_v6 }
 0x145   :  { %555 = vst [vmem:[#allocation8 + $0x88] sm:$0xff] %v537_v8 }
 0x146   :  { %749 = shalt.err (!%p746_p6)
}
 0x147   :  { %s750_s17 = scalar_lea.hbm %s861_s3, 2304 }
 0x148   :  { %p751_p7 = scmp.ne.s32.totalorder %s861_s3, %s750_s17  ;;  %p754_p8 = scmp.lt.u32.totalorder %s750_s17, %s861_s3 }
 0x14a   :  { %p756_p9 = pnand %p754_p8, %p751_p7 }
 0x14c   :  { %759 = shalt.err (!%p756_p9)
}
 0x14d   :  { %567 = dma.vmem_to_hbm [thread:$0]  %s562_s13, 2304, %s861_s3, [#allocation5], %s770_s0, %s770_s0, %s771_s9  }
 0x14e   :  { %764 = dma.done.wait [#allocation5], 2304  }
 0x14f   :  { %765 = vsyncadd [#allocation5], 4294964992 }
 0x150   :  { %571 = vsyncpa [#allocation4], 1 }
 0x151   :  { %572 = vsyncpa [#allocation7], 1 }
 0x152   :  { %573 = vsyncpa [#allocation5], 1 }

</bundles_post_ra>
